<compile_context>
chip_gen: v7x
topology: tpu7x:2x2x1
jax: 0.10.0
libtpu: 0.0.40
codegen_flags: <defaults>
</compile_context>

<pallas_src>
import functools

import jax
import jax.numpy as jnp
from jax.experimental import pallas as pl
from jax.experimental.pallas import tpu as pltpu


# --------------------------------------------------------------------------
# Hardware-aware tiling budget
# --------------------------------------------------------------------------
@functools.lru_cache(maxsize=None)
def _tpu_budget():
    """(target block bytes, vmem_limit_bytes), sized per TPU generation."""
    try:
        cap = int(pltpu.get_tpu_info().vmem_capacity_bytes)
    except Exception:
        cap = 128 * 1024 * 1024  # v5e/v6e physical; conservative elsewhere
    # ~6 MiB blocks on 128 MiB-VMEM chips (v5e/v6e), ~4 MiB on v7x (64 MiB).
    blk = max(2 << 20, min(6 << 20, cap // 16))
    # in + out, double-buffered  =>  ~4x block; generous headroom but always
    # well under physical VMEM on every generation.
    limit = min(cap * 3 // 4, 4 * blk + (8 << 20))
    return int(blk), int(limit)


def _sublane_multiple(dtype):
    return {4: 8, 2: 16, 1: 32}.get(jnp.dtype(dtype).itemsize, 8)


def _round_up(v, m):
    return -(-int(v) // m) * m


# --------------------------------------------------------------------------
# stride == 1 (and fallback) kernel: lane-dense flat multiply-by-zero
# --------------------------------------------------------------------------
def _mulzero_kernel(x_ref, o_ref):
    # Elementwise * 0.0: preserves NaN/Inf propagation and signed zeros
    # exactly like torch.mul(0.0).
    o_ref[...] = x_ref[...] * jnp.zeros((), dtype=x_ref.dtype)


def _zero_mul_flat(x):
    """Multiply a contiguous array by 0.0 via a lane-dense Pallas kernel."""
    shape, dtype = x.shape, x.dtype
    total = x.size
    if total == 0:
        return jnp.zeros(shape, dtype)

    itemsize = jnp.dtype(dtype).itemsize
    sub = _sublane_multiple(dtype)
    blk_bytes, vmem_limit = _tpu_budget()

    # Lane-dense slab: widest 128-multiple lane width dividing the flat size;
    # otherwise pad the tail (rare) so stores stay full-vreg / unmasked.
    lane = 0
    for cand in (2048, 1024, 512, 256, 128):
        if total % cand == 0:
            lane = cand
            break
    pad = 0
    if lane == 0:
        lane = 128
        pad = (-total) % lane
    rows = (total + pad) // lane

    # Biggest tile that fits the per-generation budget...
    tile_r = max(sub, (blk_bytes // (lane * itemsize)) // sub * sub)
    # ...but keep >= ~8 grid steps for >=2 MiB tensors so input DMA, compute
    # and writeback pipeline and the parallel axis has work to split.
    if rows * lane * itemsize >= (2 << 20):
        tile_r = min(tile_r, max(sub, _round_up(pl.cdiv(rows, 8), sub)))
    tile_r = min(tile_r, rows)

    flat = x.reshape(-1)
    if pad:
        flat = jnp.pad(flat, (0, pad))  # rare path: one extra XLA pass
    x2 = flat.reshape(rows, lane)

    out2 = pl.pallas_call(
        _mulzero_kernel,
        out_shape=jax.ShapeDtypeStruct((rows, lane), dtype),
        grid=(pl.cdiv(rows, tile_r),),
        in_specs=[pl.BlockSpec((tile_r, lane), lambda i: (i, 0))],
        out_specs=pl.BlockSpec((tile_r, lane), lambda i: (i, 0)),
        compiler_params=pltpu.CompilerParams(
            dimension_semantics=("parallel",),
            vmem_limit_bytes=vmem_limit,
        ),
        cost_estimate=pl.CostEstimate(
            flops=rows * lane,
            transcendentals=0,
            bytes_accessed=2 * rows * lane * itemsize,
        ),
    )(x2)

    out = out2.reshape(-1)
    if pad:
        out = out[:total]
    return out.reshape(shape)


# --------------------------------------------------------------------------
# stride > 1: fused subsample + multiply-by-zero
#   - H subsample via index_map (only retained rows are DMA'd)
#   - W subsample via an in-kernel lane gather
# --------------------------------------------------------------------------
def _make_strided_kernel(stride, w_out):
    def kernel(x_ref, o_ref):
        # x_ref: (TNC, W)  — one retained input row (h = j*stride) per NC slice
        # o_ref: (TNC, W_out)
        cols = (
            jax.lax.broadcasted_iota(jnp.int32, (x_ref.shape[0], w_out), 1)
            * stride
        )
        kept = jnp.take_along_axis(x_ref[...], cols, axis=1)
        o_ref[...] = kept * jnp.zeros((), dtype=kept.dtype)

    return kernel


def _zero_strided_fused(x, stride):
    n, c, h, w = x.shape
    nc = n * c
    h_out, w_out = -(-h // stride), -(-w // stride)
    itemsize = jnp.dtype(x.dtype).itemsize
    sub = _sublane_multiple(x.dtype)
    blk_bytes, vmem_limit = _tpu_budget()

    tnc = min(nc, max(sub, (blk_bytes // max(w * itemsize, 1)) // sub * sub))
    x3 = x.reshape(nc, h, w)

    out3 = pl.pallas_call(
        _make_strided_kernel(stride, w_out),
        out_shape=jax.ShapeDtypeStruct((nc, h_out, w_out), x.dtype),
        grid=(pl.cdiv(nc, tnc), h_out),
        in_specs=[
            # H dim squeezed; block index for it == element index == j*stride,
            # so dropped rows are never read from HBM.
            pl.BlockSpec((tnc, None, w), lambda i, j: (i, j * stride, 0))
        ],
        out_specs=pl.BlockSpec((tnc, None, w_out), lambda i, j: (i, j, 0)),
        compiler_params=pltpu.CompilerParams(
            dimension_semantics=("parallel", "parallel"),
            vmem_limit_bytes=vmem_limit,
        ),
        cost_estimate=pl.CostEstimate(
            flops=nc * h_out * w,
            transcendentals=0,
            bytes_accessed=(nc * h_out * w + nc * h_out * w_out) * itemsize,
        ),
    )(x3)
    return out3.reshape(n, c, h_out, w_out)


def _zero_strided_unfused(x, stride):
    # Fallback path: XLA strided slice, then the flat lane-dense kernel.
    return _zero_mul_flat(x[:, :, ::stride, ::stride])


_zero_forward_s1 = jax.jit(_zero_mul_flat)
_zero_forward_fused = jax.jit(_zero_strided_fused, static_argnums=1)
_zero_forward_unfused = jax.jit(_zero_strided_unfused, static_argnums=1)


def _fused_is_profitable(n, c, h, w, stride, itemsize):
    nc = n * c
    if nc < 8:
        return False  # sublane-sparse blocks; unfused path handles it better
    blk_bytes, _ = _tpu_budget()
    tnc = min(nc, max(8, (blk_bytes // max(w * itemsize, 1)) // 8 * 8))
    per_step_bytes = tnc * w * itemsize
    h_out = -(-h // stride)
    # Avoid grids made of many tiny steps (small NC, huge H): per-step
    # overhead (~0.35 us) would dominate there.
    return per_step_bytes >= (256 << 10) or h_out <= 256


_STRIDED_USE_FUSED = {}


def zero_forward(x, stride: int):
    """Pallas implementation of Zero.forward for NCHW input `x`."""
    stride = int(stride)
    if stride == 1:
        return _zero_forward_s1(x)

    n, c, h, w = x.shape
    h_out, w_out = -(-h // stride), -(-w // stride)
    if x.size == 0:
        return jnp.zeros((n, c, h_out, w_out), x.dtype)

    key = (tuple(x.shape), jnp.dtype(x.dtype).name, stride)
    use_fused = _STRIDED_USE_FUSED.get(key)
    if use_fused is None:
        use_fused = _fused_is_profitable(
            n, c, h, w, stride, jnp.dtype(x.dtype).itemsize
        )
        if use_fused:
            try:
                out = _zero_forward_fused(x, stride)
                jax.block_until_ready(out)
                _STRIDED_USE_FUSED[key] = True
                return out
            except Exception:
                # The in-kernel lane gather (jnp.take_along_axis) did not
                # lower on this toolchain/shape; use the unfused path.
                use_fused = False
        _STRIDED_USE_FUSED[key] = use_fused
    if use_fused:
        return _zero_forward_fused(x, stride)
    return _zero_forward_unfused(x, stride)


# --------------------------------------------------------------------------
# Self-test
# --------------------------------------------------------------------------
if __name__ == "__main__":
    key = jax.random.PRNGKey(0)
    # Small NCHW input: batch=2, channels=4, spatial=16x16.
    x = jax.random.normal(key, (2, 4, 16, 16), dtype=jnp.float32)

    ok = True
    for stride in (1, 2):
        y = zero_forward(x, stride)
        jax.block_until_ready(y)
        ref = x * 0.0 if stride == 1 else x[:, :, ::stride, ::stride] * 0.0
        ok &= (y.shape == ref.shape) and (y.dtype == ref.dtype)
        ok &= bool(jnp.all(y == ref))

    # NaN propagation must match torch.mul(0.0): NaN survives, and for the
    # strided path only at retained (subsampled) positions.
    x_nan = x.at[0, 0, 0, 0].set(jnp.nan)   # retained by stride 2
    x_nan = x_nan.at[0, 0, 2, 4].set(jnp.nan)  # retained by stride 2
    x_nan = x_nan.at[0, 0, 1, 3].set(jnp.nan)  # dropped by stride 2
    for stride in (1, 2):
        y = zero_forward(x_nan, stride)
        jax.block_until_ready(y)
        ref = (
            x_nan * 0.0
            if stride == 1
            else x_nan[:, :, ::stride, ::stride] * 0.0
        )
        ok &= bool(jnp.all(jnp.isnan(y) == jnp.isnan(ref)))

    print("KERNEL_OK" if ok else "KERNEL_FAIL")
</pallas_src>

<mosaic_0001>
module attributes {stable_mosaic.version = 11 : i64} {
  func.func @_mulzero_kernel(%arg0: i32, %arg1: memref<1x2048xf32, #tpu.memory_space<vmem>>, %arg2: memref<1x2048xf32, #tpu.memory_space<vmem>>) attributes {dimension_semantics = [#tpu.dimension_semantics<parallel>], iteration_bounds = array<i64: 1>, scalar_prefetch = 0 : i64, scratch_operands = 0 : i64, tpu.core_type = #tpu.core_type<tc>, window_params = [{transform_indices = @transform_0, window_bounds = array<i64: 1, 2048>}, {transform_indices = @transform_1, window_bounds = array<i64: 1, 2048>}]} {
    %c0 = arith.constant 0 : index
    %c0_0 = arith.constant 0 : index
    %0 = vector.load %arg1[%c0, %c0_0] : memref<1x2048xf32, #tpu.memory_space<vmem>>, vector<1x2048xf32>
    %cst = arith.constant 0.000000e+00 : f32
    %1 = vector.broadcast %cst : f32 to vector<1x2048xf32>
    %2 = arith.mulf %0, %1 : vector<1x2048xf32>
    %c0_1 = arith.constant 0 : index
    %c0_2 = arith.constant 0 : index
    %3 = vector.load %arg2[%c0_1, %c0_2] : memref<1x2048xf32, #tpu.memory_space<vmem>>, vector<1x2048xf32>
    tpu.vector_store %arg2[%c0_1, %c0_2], %2 {strides = array<i32>} : memref<1x2048xf32, #tpu.memory_space<vmem>>, vector<1x2048xf32>,
    return
  }
  func.func @transform_0(%arg0: i32) -> (i32, i32) {
    %c0_i32 = arith.constant 0 : i32
    %c0_i32_0 = arith.constant 0 : i32
    return %arg0, %c0_i32 : i32, i32
  }
  func.func @transform_1(%arg0: i32) -> (i32, i32) {
    %c0_i32 = arith.constant 0 : i32
    %c0_i32_0 = arith.constant 0 : i32
    return %arg0, %c0_i32 : i32, i32
  }
}

</mosaic_0001>

<bundles_post_ra>
// kernel: _zero_mul_flat.1
= control target key start
LH: loop header
LB: loop body
LE: loop exit
PB: predicated region body
PF: predicated region fallthrough
CT: control target
= control target key end

     0   :  { %s40_s0 = inlined_call_operand.vmem [shape: f32[1,2048], index: 0, kind: input, shape index: {}]   ;;  %s41_s1 = inlined_call_operand.vmem [shape: f32[1,2048], index: 1, kind: output, shape index: {}]  }
   0x1   :  { %v8_v0 = vld [vmem:[%s40_s0] sm:$0xff]  ;;  %v9_v1 = vld [vmem:[%s40_s0 + $0x8] sm:$0xff] }
   0x2   :  { %v10_v2 = vmul.f32 0.0, %v8_v0  ;;  %v11_v3 = vmul.f32 0.0, %v9_v1 }
   0x4   :  { %12 = vst [vmem:[%s41_s1] sm:$0xff] %v10_v2  ;;  %13 = vst [vmem:[%s41_s1 + $0x8] sm:$0xff] %v11_v3 }

</bundles_post_ra>
